<compile_context>
chip_gen: v5e
topology: v5e:2x2
jax: 0.10.0
libtpu: 0.0.40
codegen_flags: <defaults>
</compile_context>

<pallas_src>
import functools

import jax
import jax.numpy as jnp
from jax.experimental import pallas as pl
from jax.experimental.pallas import tpu as pltpu


def _round_up(a, b):
    return (a + b - 1) // b * b


def _choose_ts(S, bytes_per_col, budget_bytes=2 * 1024 * 1024):
    """Lane-tile size along the reduced axis: fill a ~2 MiB/input byte budget,
    keep padding waste bounded, never exceed the (padded) axis length."""
    S = max(int(S), 1)
    if S * bytes_per_col <= budget_bytes:
        return S  # whole reduced axis in one tile (full-dim block, no padding)
    ts = max(128, (budget_bytes // max(bytes_per_col, 1)) // 128 * 128)
    ts = min(ts, _round_up(S, 128))
    # Bound the padded tail to ~12.5% of S (padded zero columns are real HBM reads).
    while ts > 1024 and (_round_up(S, ts) - S) > max(S // 8, 128):
        ts = max(1024, _round_up(ts // 2, 128))
    return ts


# ----------------------------- kernels -----------------------------
def _dice_sums_dense_kernel(x_ref, y_ref, isum_ref, dsum_ref):
    """y given as a dense (soft) target of the same shape as x."""
    @pl.when(pl.program_id(1) == 0)
    def _():
        isum_ref[...] = jnp.zeros_like(isum_ref)
        dsum_ref[...] = jnp.zeros_like(dsum_ref)

    x = x_ref[0].astype(jnp.float32)          # (C, TS)
    y = y_ref[0].astype(jnp.float32)          # (C, TS)
    isum_ref[...] += jnp.sum(x * y, axis=-1, keepdims=True)[None]
    dsum_ref[...] += jnp.sum(x * x + y * y, axis=-1, keepdims=True)[None]


def _dice_sums_label_kernel(x_ref, lab_ref, isum_ref, dsum_ref):
    """y given as integer labels; one-hot is built in-kernel (never hits HBM)."""
    @pl.when(pl.program_id(1) == 0)
    def _():
        isum_ref[...] = jnp.zeros_like(isum_ref)
        dsum_ref[...] = jnp.zeros_like(dsum_ref)

    x = x_ref[0].astype(jnp.float32)                          # (C, TS)
    lab = lab_ref[0]                                          # (1, TS) int32
    ch = jax.lax.broadcasted_iota(jnp.int32, x.shape, 0)      # channel id per row
    onehot = (lab == ch).astype(jnp.float32)                  # (C, TS); pad cols are -1 -> 0
    isum_ref[...] += jnp.sum(x * onehot, axis=-1, keepdims=True)[None]
    # onehot**2 == onehot, so denominator needs only x*x + onehot.
    dsum_ref[...] += jnp.sum(x * x + onehot, axis=-1, keepdims=True)[None]


# ----------------------------- wrapper -----------------------------
def soft_dice_loss_squared(x, y, loss_mask=None, *, apply_nonlin=None,
                           batch_dice=False, do_bg=True, smooth=1.0):
    """Forward of SoftDiceLossSquared (loss_mask accepted but unused, as in torch)."""
    del loss_mask  # the reference forward never uses it
    if apply_nonlin is not None:
        x = apply_nonlin(x)
    # Keep x in its native dtype (bf16 stays bf16): the kernel is HBM-bandwidth
    # bound and casts to f32 only inside VMEM for accumulation.
    N, C = int(x.shape[0]), int(x.shape[1])
    S = 1
    for d in x.shape[2:]:
        S *= int(d)
    x3 = x.reshape(N, C, S)

    # ---- target handling (mirrors the torch branches) ----
    if y.ndim == x.ndim - 1:
        y = y[:, None, ...]
    label_path = tuple(y.shape) != tuple(x.shape)

    if label_path:
        other = jnp.squeeze(y, axis=1).astype(jnp.int32).reshape(N, 1, S)
        other_bytes_per_col = 4
        other_block = (1, 1, None)  # lane dim filled in below
        kernel = _dice_sums_label_kernel
    else:
        y3 = y
        if not jnp.issubdtype(y3.dtype, jnp.floating):
            y3 = y3.astype(x.dtype)           # 0/1 targets are exact in bf16
        other = y3.reshape(N, C, S)
        other_bytes_per_col = C * other.dtype.itemsize
        other_block = (1, C, None)
        kernel = _dice_sums_dense_kernel

    # ---- tile sizing by byte budget ----
    x_bytes_per_col = C * x3.dtype.itemsize
    TS = _choose_ts(S, x_bytes_per_col + other_bytes_per_col)
    SP = S if TS >= S else _round_up(S, TS)
    if SP != S:
        x3 = jnp.pad(x3, ((0, 0), (0, 0), (0, SP - S)))
        if label_path:
            # pad labels with -1 so padded columns match no channel
            other = jnp.pad(other, ((0, 0), (0, 0), (0, SP - S)), constant_values=-1)
        else:
            other = jnp.pad(other, ((0, 0), (0, 0), (0, SP - S)))
    other_block = (other_block[0], other_block[1], TS)

    grid = (N, SP // TS)
    x_bytes = N * C * SP * x3.dtype.itemsize
    other_bytes = N * (1 if label_path else C) * SP * other.dtype.itemsize

    isum, dsum = pl.pallas_call(
        kernel,
        out_shape=(jax.ShapeDtypeStruct((N, C, 1), jnp.float32),
                   jax.ShapeDtypeStruct((N, C, 1), jnp.float32)),
        grid=grid,
        in_specs=[
            pl.BlockSpec((1, C, TS), lambda n, s: (n, 0, s)),
            pl.BlockSpec(other_block, lambda n, s: (n, 0, s)),
        ],
        out_specs=(
            pl.BlockSpec((1, C, 1), lambda n, s: (n, 0, 0)),
            pl.BlockSpec((1, C, 1), lambda n, s: (n, 0, 0)),
        ),
        compiler_params=pltpu.CompilerParams(
            # batch axis parallel (2-TC sharding on v7x); reduction axis carried.
            dimension_semantics=("parallel", "arbitrary"),
            vmem_limit_bytes=32 * 1024 * 1024),
        cost_estimate=pl.CostEstimate(
            flops=6 * N * C * SP,
            transcendentals=0,
            bytes_accessed=x_bytes + other_bytes + 2 * N * C * 4),
    )(x3, other)

    # ---- tiny epilogue in plain JAX (N*C scalars) ----
    isum = isum[..., 0]
    dsum = dsum[..., 0]
    if batch_dice:
        isum = jnp.sum(isum, axis=0)          # (C,)
        dsum = jnp.sum(dsum, axis=0)
    dc = 2.0 * (isum + smooth) / (dsum + smooth)
    if not do_bg:
        dc = dc[1:] if batch_dice else dc[:, 1:]
    return -jnp.mean(dc)


# ------------------------- pure-JAX reference -------------------------
def _ref_soft_dice_squared(x, y, *, apply_nonlin=None, batch_dice=False,
                           do_bg=True, smooth=1.0):
    if apply_nonlin is not None:
        x = apply_nonlin(x)
    x = x.astype(jnp.float32)
    C = x.shape[1]
    if y.ndim == x.ndim - 1:
        y = y[:, None, ...]
    if y.shape == x.shape:
        y_onehot = y.astype(jnp.float32)
    else:
        y_onehot = jax.nn.one_hot(jnp.squeeze(y, 1).astype(jnp.int32), C,
                                  axis=1, dtype=jnp.float32)
    axes = ((0,) if batch_dice else ()) + tuple(range(2, x.ndim))
    intersect = jnp.sum(x * y_onehot, axis=axes) + smooth
    denom = jnp.sum(x * x + y_onehot * y_onehot, axis=axes) + smooth
    dc = 2.0 * intersect / denom
    if not do_bg:
        dc = dc[1:] if batch_dice else dc[:, 1:]
    return -jnp.mean(dc)


if __name__ == "__main__":
    key = jax.random.PRNGKey(0)
    kx, ky, ks = jax.random.split(key, 3)
    N, C, H, W = 2, 4, 16, 16

    x = jax.random.normal(kx, (N, C, H, W), jnp.float32)
    y_labels = jax.random.randint(ky, (N, H, W), 0, C)  # hard labels -> in-kernel one-hot
    y_soft = jax.nn.softmax(jax.random.normal(ks, (N, C, H, W), jnp.float32), axis=1)

    cases = [
        dict(y=y_labels),
        dict(y=y_soft),
        dict(y=y_labels, do_bg=False),
        dict(y=y_labels, batch_dice=True, do_bg=False),
        dict(y=y_labels, apply_nonlin=functools.partial(jax.nn.softmax, axis=1)),
    ]
    for cfg in cases:
        y = cfg.pop("y")
        got = jax.block_until_ready(soft_dice_loss_squared(x, y, **cfg))
        ref = jax.block_until_ready(_ref_soft_dice_squared(x, y, **cfg))
        assert got.shape == (), got.shape
        assert jnp.allclose(got, ref, atol=1e-4, rtol=1e-4), (cfg, got, ref)

    # bf16 activations: streamed in native dtype, accumulated in f32 in-kernel.
    x_bf16 = x.astype(jnp.bfloat16)
    got = jax.block_until_ready(soft_dice_loss_squared(x_bf16, y_labels))
    ref = jax.block_until_ready(_ref_soft_dice_squared(x_bf16, y_labels))
    assert jnp.allclose(got, ref, atol=1e-3, rtol=1e-3), (got, ref)

    print("KERNEL_OK")
</pallas_src>

<mosaic_0001>
module attributes {stable_mosaic.version = 11 : i64} {
  func.func @_dice_sums_label_kernel(%arg0: i32, %arg1: i32, %arg2: memref<1x4x256xf32, #tpu.memory_space<vmem>>, %arg3: memref<1x1x256xi32, #tpu.memory_space<vmem>>, %arg4: memref<1x4x1xf32, #tpu.memory_space<vmem>>, %arg5: memref<1x4x1xf32, #tpu.memory_space<vmem>>) attributes {dimension_semantics = [#tpu.dimension_semantics<parallel>, #tpu.dimension_semantics<arbitrary>], iteration_bounds = array<i64: 2, 1>, scalar_prefetch = 0 : i64, scratch_operands = 0 : i64, tpu.core_type = #tpu.core_type<tc>, window_params = [{transform_indices = @transform_0, window_bounds = array<i64: 1, 4, 256>}, {transform_indices = @transform_1, window_bounds = array<i64: 1, 1, 256>}, {transform_indices = @transform_2, window_bounds = array<i64: 1, 4, 1>}, {transform_indices = @transform_3, window_bounds = array<i64: 1, 4, 1>}]} {
    %c0_i32 = arith.constant 0 : i32
    %0 = arith.cmpi eq, %arg1, %c0_i32 : i32
    %1 = arith.extui %0 : i1 to i32
    %c0_i32_0 = arith.constant 0 : i32
    %2 = arith.cmpi ne, %1, %c0_i32_0 : i32
    scf.if %2 {
      %cst_19 = arith.constant 0.000000e+00 : f32
      %27 = vector.broadcast %cst_19 : f32 to vector<1x4x1xf32>
      %c0_20 = arith.constant 0 : index
      %c0_21 = arith.constant 0 : index
      %c0_22 = arith.constant 0 : index
      %28 = vector.load %arg4[%c0_20, %c0_21, %c0_22] : memref<1x4x1xf32, #tpu.memory_space<vmem>>, vector<1x4x1xf32>
      tpu.vector_store %arg4[%c0_20, %c0_21, %c0_22], %27 {strides = array<i32>} : memref<1x4x1xf32, #tpu.memory_space<vmem>>, vector<1x4x1xf32>,
      %cst_23 = arith.constant 0.000000e+00 : f32
      %29 = vector.broadcast %cst_23 : f32 to vector<1x4x1xf32>
      %c0_24 = arith.constant 0 : index
      %c0_25 = arith.constant 0 : index
      %c0_26 = arith.constant 0 : index
      %30 = vector.load %arg5[%c0_24, %c0_25, %c0_26] : memref<1x4x1xf32, #tpu.memory_space<vmem>>, vector<1x4x1xf32>
      tpu.vector_store %arg5[%c0_24, %c0_25, %c0_26], %29 {strides = array<i32>} : memref<1x4x1xf32, #tpu.memory_space<vmem>>, vector<1x4x1xf32>,
    } else {
    }
    %c0 = arith.constant 0 : index
    %c0_1 = arith.constant 0 : index
    %c0_2 = arith.constant 0 : index
    %3 = vector.load %arg2[%c0, %c0_1, %c0_2] : memref<1x4x256xf32, #tpu.memory_space<vmem>>, vector<1x4x256xf32>
    %4 = vector.shape_cast %3 : vector<1x4x256xf32> to vector<4x256xf32>
    %c0_3 = arith.constant 0 : index
    %c0_4 = arith.constant 0 : index
    %c0_5 = arith.constant 0 : index
    %5 = vector.load %arg3[%c0_3, %c0_4, %c0_5] : memref<1x1x256xi32, #tpu.memory_space<vmem>>, vector<1x1x256xi32>
    %6 = vector.shape_cast %5 : vector<1x1x256xi32> to vector<1x256xi32>
    %7 = tpu.iota {dimensions = array<i32: 0>} : vector<4x256xi32>
    %8 = vector.broadcast %6 : vector<1x256xi32> to vector<4x256xi32>
    %9 = arith.cmpi eq, %8, %7 : vector<4x256xi32>
    %10 = arith.extui %9 : vector<4x256xi1> to vector<4x256xi32>
    %11 = arith.sitofp %10 : vector<4x256xi32> to vector<4x256xf32>
    %c0_6 = arith.constant 0 : index
    %c0_7 = arith.constant 0 : index
    %c0_8 = arith.constant 0 : index
    %12 = vector.load %arg4[%c0_6, %c0_7, %c0_8] : memref<1x4x1xf32, #tpu.memory_space<vmem>>, vector<1x4x1xf32>
    %13 = arith.mulf %4, %11 : vector<4x256xf32>
    %cst = arith.constant dense<0.000000e+00> : vector<4xf32>
    %14 = vector.multi_reduction <add>, %13, %cst [1] : vector<4x256xf32> to vector<4xf32>
    %15 = vector.shape_cast %14 : vector<4xf32> to vector<4x1xf32>
    %16 = vector.shape_cast %15 : vector<4x1xf32> to vector<1x4x1xf32>
    %17 = arith.addf %12, %16 : vector<1x4x1xf32>
    %c0_9 = arith.constant 0 : index
    %c0_10 = arith.constant 0 : index
    %c0_11 = arith.constant 0 : index
    %18 = vector.load %arg4[%c0_9, %c0_10, %c0_11] : memref<1x4x1xf32, #tpu.memory_space<vmem>>, vector<1x4x1xf32>
    tpu.vector_store %arg4[%c0_9, %c0_10, %c0_11], %17 {strides = array<i32>} : memref<1x4x1xf32, #tpu.memory_space<vmem>>, vector<1x4x1xf32>,
    %c0_12 = arith.constant 0 : index
    %c0_13 = arith.constant 0 : index
    %c0_14 = arith.constant 0 : index
    %19 = vector.load %arg5[%c0_12, %c0_13, %c0_14] : memref<1x4x1xf32, #tpu.memory_space<vmem>>, vector<1x4x1xf32>
    %20 = arith.mulf %4, %4 : vector<4x256xf32>
    %21 = arith.addf %20, %11 : vector<4x256xf32>
    %cst_15 = arith.constant dense<0.000000e+00> : vector<4xf32>
    %22 = vector.multi_reduction <add>, %21, %cst_15 [1] : vector<4x256xf32> to vector<4xf32>
    %23 = vector.shape_cast %22 : vector<4xf32> to vector<4x1xf32>
    %24 = vector.shape_cast %23 : vector<4x1xf32> to vector<1x4x1xf32>
    %25 = arith.addf %19, %24 : vector<1x4x1xf32>
    %c0_16 = arith.constant 0 : index
    %c0_17 = arith.constant 0 : index
    %c0_18 = arith.constant 0 : index
    %26 = vector.load %arg5[%c0_16, %c0_17, %c0_18] : memref<1x4x1xf32, #tpu.memory_space<vmem>>, vector<1x4x1xf32>
    tpu.vector_store %arg5[%c0_16, %c0_17, %c0_18], %25 {strides = array<i32>} : memref<1x4x1xf32, #tpu.memory_space<vmem>>, vector<1x4x1xf32>,
    return
  }
  func.func @transform_0(%arg0: i32, %arg1: i32) -> (i32, i32, i32) {
    %c0_i32 = arith.constant 0 : i32
    %c0_i32_0 = arith.constant 0 : i32
    return %arg0, %c0_i32, %arg1 : i32, i32, i32
  }
  func.func @transform_1(%arg0: i32, %arg1: i32) -> (i32, i32, i32) {
    %c0_i32 = arith.constant 0 : i32
    %c0_i32_0 = arith.constant 0 : i32
    return %arg0, %c0_i32, %arg1 : i32, i32, i32
  }
  func.func @transform_2(%arg0: i32, %arg1: i32) -> (i32, i32, i32) {
    %c0_i32 = arith.constant 0 : i32
    %c0_i32_0 = arith.constant 0 : i32
    %c0_i32_1 = arith.constant 0 : i32
    return %arg0, %c0_i32, %c0_i32_0 : i32, i32, i32
  }
  func.func @transform_3(%arg0: i32, %arg1: i32) -> (i32, i32, i32) {
    %c0_i32 = arith.constant 0 : i32
    %c0_i32_0 = arith.constant 0 : i32
    %c0_i32_1 = arith.constant 0 : i32
    return %arg0, %c0_i32, %c0_i32_0 : i32, i32, i32
  }
}

</mosaic_0001>

<bundles_post_ra>
// kernel: tpu_custom_call.1
= control target key start
LH: loop header
LB: loop body
LE: loop exit
PB: predicated region body
PF: predicated region fallthrough
CT: control target
= control target key end

     0   :  { %9 = vsyncpa [#allocation3], 0  ;;  %s788_s0 = inlined_call_operand.hbm [shape: f32[2,4,256], index: 0, kind: input, shape index: {}]   ;;  %s789_s1 = inlined_call_operand.hbm [shape: s32[2,1,256], index: 1, kind: input, shape index: {}]   ;;  %s790_s2 = inlined_call_operand.vmem [shape: f32[2,4,1], index: 2, kind: output, shape index: {0}]   ;;  %s791_s3 = inlined_call_operand.vmem [shape: f32[2,4,1], index: 3, kind: output, shape index: {1}]  }
   0x1   :  { %11 = vsyncpa [#allocation3 + $0x1], 0 }
   0x2   :  { %12 = vsyncpa [#allocation5], 0 }
   0x3   :  { %14 = vsyncpa [#allocation5 + $0x1], 0  ;;  %s667_s12 = smov 0   ;;  %s669_s13 = smov 0  }
   0x4   :  { %s671_s14 = smov 0   ;;  %s673_s15 = smov 0  }
   0x5   :  { %s675_s16 = smov 0   ;;  %s677_s17 = smov 0  }
   0x6 LB: > { %s450_s18 = sadd.s32 4294967295, %s644_s17   ;;  %s32_s19 = sadd.s32 1, %s640_s16  ;;  %s644_s17 = sphi %s677_s17, %s20_s17   ;;  %s640_s16 = sphi %s675_s16, %s799_s16   ;;  %s636_s15 = sphi %s673_s15, %s798_s15   ;;  %s632_s14 = sphi %s671_s14, %s797_s14   ;;  %s628_s13 = sphi %s669_s13, %s796_s13   ;;  %s624_s12 = sphi %s667_s12, %s795_s12  }
   0x7   : > { %p34_p0 = scmp.ge.s32.totalorder %s32_s19, 2  ;;  %s41_s20 = sadd.s32 1, %s632_s14 }
   0x8   : > { %p48_p1 = scmp.ne.s32.totalorder %s632_s14, %s628_s13  ;;  %p49_p2 = scmp.eq.s32.totalorder %s644_s17, 0 }
   0x9   : > { %s801_s19 = smov (%p34_p0, %s32_s19), 0  ;;  %p54_p4 = scmp.ne.s32.totalorder %s628_s13, %s624_s12 }
   0xa   : > { %p703_p3 = por %p49_p2, %p48_p1  ;;  %s36_s22 = ssub.s32 %s640_s16, %s801_s19 }
   0xb   : > { %p55_p5 = scmp.eq.s32.totalorder %s450_s18, 0  ;;  %p39_p6 = scmp.eq.s32.totalorder %s36_s22, 0 }
   0xc   : > { %p480_p8 = scmp.lt.s32.totalorder %s644_s17, 2  ;;  %s158_s25 = sand.u32 1, %s632_s14  }
   0xd   : > { %p710_p7 = por %p55_p5, %p54_p4  ;;  %s468_s26 = sshll.u32 %s640_s16, 3 }
   0xe   : > { %s716_s24 = scalar_select %p39_p6, %s632_s14, %s41_s20  }
   0xf   : > { %s454_s27 = sshll.u32 %s158_s25, 3  ;;  %s169_s30 = scalar_lea.hbm %s788_s0, %s468_s26 }
  0x10   : > { %s171_s4 = sshll.u32 %s169_s30, 4  ;;  %s162_s5 = scalar_lea.vmem [#allocation2], %s454_s27  ;;  %s172_s4 = int_to_ptr.hbm [resolvable:$true] %s171_s4 }
  0x11   : > { %s173_s6 = sshll.u32 %s162_s5, 4  ;;  %p725_p9 = pnand %p480_p8, %p703_p3  ;;  %s174_s6 = int_to_ptr.vmem [resolvable:$true] %s173_s6 }
  0x12   : > { %p459_p10 = scmp.ge.s32.totalorder %s644_s17, 1  ;;  %p199_p11 = scmp.lt.s32.totalorder %s644_s17, 3 }
  0x13   : > { %s457_s8 = sshll.u32 %s158_s25, 1  ;;  %s159_s9 = scalar_lea.sflag [#allocation3], %s158_s25 }
  0x14   : > { %476 = dma.hbm_to_vmem [thread:$0]  (!%p725_p9), %s172_s4, 128, %s174_s6, %s159_s9  }
  0x15   : > { %p200_p12 = pnand %p459_p10, %p199_p11  ;;  %s458_s10 = sshll.u32 %s640_s16, 1 }
  0x16   : > { %s184_s11 = scalar_lea.vmem [#allocation4], %s457_s8  ;;  %s190_s21 = scalar_lea.hbm %s789_s1, %s458_s10 }
  0x17   : > { %s194_s12 = sshll.u32 %s184_s11, 4  ;;  %s192_s22 = sshll.u32 %s190_s21, 4  ;;  %s195_s12 = int_to_ptr.vmem [resolvable:$true] %s194_s12  ;;  %s193_s22 = int_to_ptr.hbm [resolvable:$true] %s192_s22 }
  0x18   : > { %s181_s26 = scalar_lea.sflag [#allocation5], %s158_s25  ;;  %203 = sbr.rel (%p200_p12) target bundleno = 182 (0xb6), region = 28 }
  0x19   : > { %479 = dma.hbm_to_vmem [thread:$0]  (!%p725_p9), %s193_s22, 32, %s195_s12, %s181_s26  }
  0x1a   : > { %s205_s27 = sand.u32 (!%p200_p12), 1, %s628_s13  }
  0x1b   : > { %s460_s28 = sshll.u32 (!%p200_p12), %s205_s27, 3  ;;  %s206_s29 = scalar_lea.sflag (!%p200_p12), [#allocation3], %s205_s27 }
  0x1c   : > { %s209_s30 = scalar_lea.vmem (!%p200_p12), [#allocation2], %s460_s28 }
  0x1d   : > { %615 = dma.done.wait (%p710_p7), %s206_s29, 128  }
  0x1e   : > { %617 = vsyncadd (%p710_p7), %s206_s29, 4294967168  ;;  %s461_s4 = sshll.u32 %s205_s27, 1  ;;  %s216_s5 = scalar_lea.sflag [#allocation5], %s205_s27 }
  0x1f   : > { %s219_s6 = scalar_lea.vmem [#allocation4], %s461_s4 }
  0x20   : > { %619 = dma.done.wait (%p710_p7), %s216_s5, 32  }
  0x21   : > { %621 = vsyncadd (%p710_p7), %s216_s5, 4294967264  ;;  %p253_p13 = scmp.lt.s32.totalorder %s636_s15, 1  ;;  %v270_v0 = vlaneseq  ;;  %vm265_vm0 = vcmask 3072   ;;  %v646_v2 = vmov 0.0   ;;  %v269_v3 = vld [vmem:[%s219_s6] sm:$0x3] }
  0x22   : > { %v272_v4 = vperm.slane %v269_v3, 0  ;;  %v273_v5 = vperm.slane %v269_v3, 1  ;;  %vm284_vm3 = vcmask 1043456   ;;  %v268_v8 = vld [vmem:[%s209_s30] sm:$0xff] }
  0x23   : > { %s803_s15 = smov (!%p253_p13, %s636_s15), 1  ;;  %v271_v1 = vshrl.u32 %v270_v0, 7  ;;  %v303_v12 = vmul.f32 %v268_v8, %v268_v8 }
  0x24   : > { %s462_s25 = sshll.u32 %s803_s15, 2 }
  0x25   : > { %s753_s9 = scalar_lea.vmem %s790_s2, %s462_s25  ;;  %vm274_vm1 = vcmp.eq.s32.totalorder %v272_v4, %v271_v1  ;;  %vm275_vm2 = vcmp.eq.s32.totalorder %v273_v5, %v271_v1  ;;  %s260_s10 = scalar_lea.vmem %s791_s3, %s462_s25 }
  0x26   : > { %266 = vst.msk [vmem:[%s753_s9] sm:$0xf] %vm265_vm0, %v646_v2  ;;  %v464_v6 = vsel %vm274_vm1, 1.0, %v646_v2  ;;  %v465_v7 = vsel %vm275_vm2, 1.0, %v646_v2 }
  0x27   : > { %v283_v9 = vrot.slane %v465_v7, 4  ;;  %267 = vst.msk [vmem:[%s260_s10] sm:$0xf] %vm265_vm0, %v646_v2 }
  0x29   : > { %v285_v10 = vsel %vm284_vm3, %v464_v6, %v283_v9 }
  0x2a   : > { %v287_v11 = vmul.f32 %v285_v10, %v268_v8  ;;  %v304_v13 = vadd.f32 %v303_v12, %v285_v10 }
  0x2c   : > { %289 = vst [vmem:[#allocation1] ss:$2 sm:$0xff] %v287_v11 }
  0x2d   : > { %v280_v24 = vld [vmem:[%s753_s9] sm:$0xf] }
  0x2e   : > { %v302_v27 = vld [vmem:[%s260_s10] sm:$0xf] }
  0x33   : > { %v290_v14 = vld.sshfl [vmem:[#allocation1] sm:$0xff pattern:$0x75316420]  ;;  %v291_v15 = vld.sshfl [vmem:[#allocation1 + $0x8] sm:$0xff pattern:$0x75316420] }
  0x34   : > { %v294_v16 = vsel %vm284_vm3, %v290_v14, 0.0  ;;  %v295_v17 = vsel %vm284_vm3, %v291_v15, 0.0  ;;  %306 = vst [vmem:[#allocation1] ss:$2 sm:$0xff] %v304_v13 }
  0x35   : > { %v296_v18 = vadd.f32 %v295_v17, %v294_v16 }
  0x37   : > { %297 = vadd.xlane.f32.xlu0 %v296_v18 }
  0x3b   : > { %v307_v19 = vld.sshfl [vmem:[#allocation1] sm:$0xff pattern:$0x75316420]  ;;  %v308_v20 = vld.sshfl [vmem:[#allocation1 + $0x8] sm:$0xff pattern:$0x75316420] }
  0x3c   : > { %v311_v21 = vsel %vm284_vm3, %v307_v19, 0.0  ;;  %v312_v22 = vsel %vm284_vm3, %v308_v20, 0.0 }
  0x3d   : > { %v313_v23 = vadd.f32 %v312_v22, %v311_v21 }
  0x3f   : > { %314 = vadd.xlane.f32.xlu0 %v313_v23 }
  0xaa   : > { %v298_v25 = vpop.xlane.xlu0 %297 }
  0xab   : > { %v299_v26 = vadd.f32 %v298_v25, %v280_v24 }
  0xad   : > { %301 = vst.msk [vmem:[%s753_s9] sm:$0xf] %vm265_vm0, %v299_v26 }
  0xb2   : > { %v315_v28 = vpop.xlane.xlu0 %314 }
  0xb3   : > { %v316_v29 = vadd.f32 %v315_v28, %v302_v27 }
  0xb5   : > { %317 = vst.msk [vmem:[%s260_s10] sm:$0xf] %vm265_vm0, %v316_v29 }
  0xb6 PF: > { %s20_s17 = sadd.s32 1, %s644_s17   ;;  %s795_s12 = smov %s628_s13 }
  0xb7   : > { %p17_p0 = scmp.ge.s32.totalorder %s20_s17, 4   ;;  %s796_s13 = smov %s632_s14 }
  0xb8   : > { %s797_s14 = smov %s716_s24  ;;  %s798_s15 = smov %s640_s16 }
  0xb9   : > { %s799_s16 = smov %s801_s19  ;;  %19 = sbr.rel (!%p17_p0) target bundleno = 6 (0x6), region = 97 }
  0xbe   :  { %351 = vsyncpa [#allocation3], 1 }
  0xbf   :  { %353 = vsyncpa [#allocation3 + $0x1], 1 }
  0xc0   :  { %354 = vsyncpa [#allocation5], 1 }
  0xc1   :  { %356 = vsyncpa [#allocation5 + $0x1], 1 }

</bundles_post_ra>
